<compile_context>
chip_gen: v7x
topology: tpu7x:2x2x1
jax: 0.10.0
libtpu: 0.0.40
codegen_flags: <defaults>
</compile_context>

<pallas_src>
import jax
import jax.numpy as jnp
from jax.experimental import pallas as pl
from jax.experimental.pallas import tpu as pltpu

IN_FEATURES = 91
HIDDEN = 50
OUT_FEATURES = 1


def adult_mlp_kernel(x_ref, w1_ref, b1_ref, w2_ref, b2_ref, o_ref):
    # In-kernel cast to bf16 for the MXU (no extra HBM pass in the wrapper); f32 accum.
    x = x_ref[...].astype(jnp.bfloat16)                                    # (TM, 91)
    w1 = w1_ref[...].astype(jnp.bfloat16)                                  # (91, 50)

    # Layer 1: Linear(91 -> 50) + ReLU.
    h = jnp.dot(x, w1, preferred_element_type=jnp.float32)                 # (TM, 50) f32
    h = jnp.maximum(h + b1_ref[...], 0.0)

    # Layer 2: Linear(50 -> 1).  An N=1 matmul would waste a full MXU pass; do it as a
    # VPU multiply + cross-lane (XLU) reduce instead.
    z = jnp.sum(h * w2_ref[...], axis=-1, keepdims=True) + b2_ref[...]     # (TM, 1) f32

    # Numerically stable sigmoid; exp on the EUP, exact reciprocal (EUP slack -> free).
    e = jnp.exp(-jnp.abs(z))
    inv = pl.reciprocal(1.0 + e, approx=False)
    p = jnp.where(z >= 0.0, inv, e * inv)                                  # (TM, 1)

    # Lane-dense store: write the tile's results as one (TM,)-wide row of the (1, TM)
    # output block (avoids lane-width-1 masked column stores).
    o_ref[0, :] = p[:, 0]


def _round_up(n, m):
    return (n + m - 1) // m * m


def adult_model_forward_row(x, w1, b1, w2, b2, *, block_rows=8192):
    """x: (B, 91) -> probabilities as a lane-dense (1, B) float32 row.

    Weights use the transposed (in_features, out_features) layout:
      w1: (91, 50), b1: (1, 50) (or (50,)), w2: (50, 1), b2: (1, 1) (or (1,)).
    """
    B = x.shape[0]
    block_rows = max(128, (block_rows // 128) * 128)   # keep the tile 128-aligned

    if B < 128:
        # Single small tile: block dims equal the full array dims (no padding needed).
        tm = B
    else:
        # Multiple of 128; aim for >= 2 grid steps so both v7x TensorCores get work,
        # capped at block_rows (<= 8192 keeps VMEM under v5e's 16 MiB default limit).
        tm = max(128, min(block_rows, _round_up(pl.cdiv(B, 2), 128)))
    grid = (pl.cdiv(B, tm),)   # last tile may be partial; rows are independent

    b1_in = jnp.asarray(b1, jnp.float32).reshape(1, HIDDEN)
    w2_in = jnp.asarray(w2, jnp.float32).reshape(1, HIDDEN)   # (50, 1) -> (1, 50) row
    b2_in = jnp.asarray(b2, jnp.float32).reshape(1, 1)

    out_row = pl.pallas_call(
        adult_mlp_kernel,
        out_shape=jax.ShapeDtypeStruct((1, B), jnp.float32),
        grid=grid,
        in_specs=[
            # x streamed per tile in its incoming dtype (cast happens in-kernel).
            # Optional knob (per review): pipeline_mode=pl.Buffered(3) if profiling shows
            # the x DMA still exposed; double-buffering already hides it at this tile size.
            pl.BlockSpec((tm, IN_FEATURES), lambda i: (i, 0)),
            pl.BlockSpec((IN_FEATURES, HIDDEN), lambda i: (0, 0)),  # w1: VMEM-resident
            pl.BlockSpec((1, HIDDEN), lambda i: (0, 0)),            # b1
            pl.BlockSpec((1, HIDDEN), lambda i: (0, 0)),            # w2 (as a row)
            pl.BlockSpec((1, 1), lambda i: (0, 0)),                 # b2
        ],
        out_specs=pl.BlockSpec((1, tm), lambda i: (0, i)),
        compiler_params=pltpu.CompilerParams(
            # Batch steps are independent: lets v7x shard them across both TensorCores.
            dimension_semantics=("parallel",),
        ),
    )(x, w1, b1_in, w2_in, b2_in)
    return out_row


def adult_model_forward(x, w1, b1, w2, b2, *, block_rows=8192):
    """PyTorch-parity (B, 1) output. Consumers that can take the lane-dense (1, B) row
    should call adult_model_forward_row directly and skip this tiny relayout."""
    out_row = adult_model_forward_row(x, w1, b1, w2, b2, block_rows=block_rows)
    return out_row.reshape(x.shape[0], OUT_FEATURES)


def init_params(key):
    # Deterministic synthetic init (uniform, similar scale to PyTorch's default
    # Linear init: U(-1/sqrt(fan_in), 1/sqrt(fan_in))).
    k1, k2, k3, k4 = jax.random.split(key, 4)
    bound1 = 1.0 / jnp.sqrt(IN_FEATURES)
    bound2 = 1.0 / jnp.sqrt(HIDDEN)
    w1 = jax.random.uniform(k1, (IN_FEATURES, HIDDEN), jnp.float32, -bound1, bound1)
    b1 = jax.random.uniform(k2, (1, HIDDEN), jnp.float32, -bound1, bound1)
    w2 = jax.random.uniform(k3, (HIDDEN, OUT_FEATURES), jnp.float32, -bound2, bound2)
    b2 = jax.random.uniform(k4, (1, OUT_FEATURES), jnp.float32, -bound2, bound2)
    return w1, b1, w2, b2


def reference_forward(x, w1, b1, w2, b2):
    h = jnp.maximum(x @ w1 + b1, 0.0)
    return jax.nn.sigmoid(h @ w2 + b2)


if __name__ == "__main__":
    key = jax.random.PRNGKey(0)
    kx, kp, kx2 = jax.random.split(key, 3)
    w1, b1, w2, b2 = init_params(kp)

    # Small smoke test (B=8): single small tile, block dims equal full array dims.
    B = 8
    x = jax.random.normal(kx, (B, IN_FEATURES), dtype=jnp.float32)
    out = jax.block_until_ready(adult_model_forward(x, w1, b1, w2, b2))
    ref = reference_forward(x, w1, b1, w2, b2)
    assert out.shape == (B, OUT_FEATURES)
    assert bool(jnp.all(jnp.isfinite(out)))
    # bf16 x on the MXU -> compare with a modest tolerance against the f32 reference.
    assert jnp.allclose(out, ref, atol=1e-2, rtol=1e-2), float(jnp.max(jnp.abs(out - ref)))

    # Multi-tile check (B=3000): two grid steps (v7x megacore path), partial last tile,
    # VMEM-resident weights, no wrapper-side pad or cast.
    B2 = 3000
    x2 = jax.random.normal(kx2, (B2, IN_FEATURES), dtype=jnp.float32)
    out2 = jax.block_until_ready(adult_model_forward(x2, w1, b1, w2, b2))
    ref2 = reference_forward(x2, w1, b1, w2, b2)
    assert out2.shape == (B2, OUT_FEATURES)
    assert bool(jnp.all(jnp.isfinite(out2)))
    assert jnp.allclose(out2, ref2, atol=1e-2, rtol=1e-2), float(jnp.max(jnp.abs(out2 - ref2)))

    print("KERNEL_OK")
</pallas_src>

<mosaic_0001>
module attributes {stable_mosaic.version = 11 : i64} {
  func.func @adult_mlp_kernel(%arg0: i32, %arg1: memref<8x91xf32, #tpu.memory_space<vmem>>, %arg2: memref<91x50xf32, #tpu.memory_space<vmem>>, %arg3: memref<1x50xf32, #tpu.memory_space<vmem>>, %arg4: memref<1x50xf32, #tpu.memory_space<vmem>>, %arg5: memref<1x1xf32, #tpu.memory_space<vmem>>, %arg6: memref<1x8xf32, #tpu.memory_space<vmem>>) attributes {dimension_semantics = [#tpu.dimension_semantics<parallel>], iteration_bounds = array<i64: 1>, scalar_prefetch = 0 : i64, scratch_operands = 0 : i64, tpu.core_type = #tpu.core_type<tc>, window_params = [{transform_indices = @transform_0, window_bounds = array<i64: 8, 91>}, {pipeline_mode = #tpu.pipeline_mode<synchronous>, transform_indices = @transform_1, window_bounds = array<i64: 91, 50>}, {pipeline_mode = #tpu.pipeline_mode<synchronous>, transform_indices = @transform_2, window_bounds = array<i64: 1, 50>}, {pipeline_mode = #tpu.pipeline_mode<synchronous>, transform_indices = @transform_3, window_bounds = array<i64: 1, 50>}, {pipeline_mode = #tpu.pipeline_mode<synchronous>, transform_indices = @transform_4, window_bounds = array<i64: 1, 1>}, {transform_indices = @transform_5, window_bounds = array<i64: 1, 8>}]} {
    %c0 = arith.constant 0 : index
    %c0_0 = arith.constant 0 : index
    %0 = vector.load %arg1[%c0, %c0_0] : memref<8x91xf32, #tpu.memory_space<vmem>>, vector<8x91xf32>
    %1 = arith.truncf %0 : vector<8x91xf32> to vector<8x91xbf16>
    %c0_1 = arith.constant 0 : index
    %c0_2 = arith.constant 0 : index
    %2 = vector.load %arg2[%c0_1, %c0_2] : memref<91x50xf32, #tpu.memory_space<vmem>>, vector<91x50xf32>
    %3 = arith.truncf %2 : vector<91x50xf32> to vector<91x50xbf16>
    %cst = arith.constant dense<0.000000e+00> : vector<8x50xf32>
    %4 = tpu.matmul %1, %3, %cst {dimension_numbers = #tpu.dot_dimension_numbers<[1], [0], [0], [1], [0, 0, 1, 1], [], []>} : vector<8x91xbf16>, vector<91x50xbf16>, vector<8x50xf32> -> vector<8x50xf32>
    %c0_3 = arith.constant 0 : index
    %c0_4 = arith.constant 0 : index
    %5 = vector.load %arg3[%c0_3, %c0_4] : memref<1x50xf32, #tpu.memory_space<vmem>>, vector<1x50xf32>
    %6 = vector.broadcast %5 : vector<1x50xf32> to vector<8x50xf32>
    %7 = arith.addf %4, %6 : vector<8x50xf32>
    %cst_5 = arith.constant 0.000000e+00 : f32
    %8 = vector.broadcast %cst_5 : f32 to vector<8x50xf32>
    %9 = arith.maximumf %7, %8 : vector<8x50xf32>
    %c0_6 = arith.constant 0 : index
    %c0_7 = arith.constant 0 : index
    %10 = vector.load %arg4[%c0_6, %c0_7] : memref<1x50xf32, #tpu.memory_space<vmem>>, vector<1x50xf32>
    %11 = vector.broadcast %10 : vector<1x50xf32> to vector<8x50xf32>
    %12 = arith.mulf %9, %11 : vector<8x50xf32>
    %cst_8 = arith.constant dense<0.000000e+00> : vector<8xf32>
    %13 = vector.multi_reduction <add>, %12, %cst_8 [1] : vector<8x50xf32> to vector<8xf32>
    %14 = vector.shape_cast %13 : vector<8xf32> to vector<8x1xf32>
    %c0_9 = arith.constant 0 : index
    %c0_10 = arith.constant 0 : index
    %15 = vector.load %arg5[%c0_9, %c0_10] : memref<1x1xf32, #tpu.memory_space<vmem>>, vector<1x1xf32>
    %16 = vector.broadcast %15 : vector<1x1xf32> to vector<8x1xf32>
    %17 = arith.addf %14, %16 : vector<8x1xf32>
    %18 = math.absf %17 : vector<8x1xf32>
    %cst_11 = arith.constant 0.000000e+00 : f32
    %19 = vector.broadcast %cst_11 : f32 to vector<8x1xf32>
    %20 = arith.subf %19, %18 : vector<8x1xf32>
    %21 = math.exp %20 : vector<8x1xf32>
    %cst_12 = arith.constant 1.000000e+00 : f32
    %22 = vector.broadcast %cst_12 : f32 to vector<8x1xf32>
    %23 = arith.addf %22, %21 : vector<8x1xf32>
    %24 = tpu.reciprocal %23 : vector<8x1xf32> -> vector<8x1xf32>
    %cst_13 = arith.constant 0.000000e+00 : f32
    %25 = vector.broadcast %cst_13 : f32 to vector<8x1xf32>
    %26 = arith.cmpf oge, %17, %25 : vector<8x1xf32>
    %27 = arith.mulf %21, %24 : vector<8x1xf32>
    %28 = arith.select %26, %24, %27 : vector<8x1xi1>, vector<8x1xf32>
    %29 = vector.shape_cast %28 : vector<8x1xf32> to vector<8xf32>
    %c0_14 = arith.constant 0 : index
    %c0_15 = arith.constant 0 : index
    %30 = vector.load %arg6[%c0_14, %c0_15] : memref<1x8xf32, #tpu.memory_space<vmem>>, vector<1x8xf32>
    %31 = vector.shape_cast %30 : vector<1x8xf32> to vector<8xf32>
    %32 = vector.shape_cast %29 : vector<8xf32> to vector<1x8xf32>
    tpu.vector_store %arg6[%c0_14, %c0_15], %32 {strides = array<i32>} : memref<1x8xf32, #tpu.memory_space<vmem>>, vector<1x8xf32>,
    return
  }
  func.func @transform_0(%arg0: i32) -> (i32, i32) {
    %c0_i32 = arith.constant 0 : i32
    %c0_i32_0 = arith.constant 0 : i32
    return %arg0, %c0_i32 : i32, i32
  }
  func.func @transform_1(%arg0: i32) -> (i32, i32) {
    %c0_i32 = arith.constant 0 : i32
    %c0_i32_0 = arith.constant 0 : i32
    %c0_i32_1 = arith.constant 0 : i32
    return %c0_i32, %c0_i32_0 : i32, i32
  }
  func.func @transform_2(%arg0: i32) -> (i32, i32) {
    %c0_i32 = arith.constant 0 : i32
    %c0_i32_0 = arith.constant 0 : i32
    %c0_i32_1 = arith.constant 0 : i32
    return %c0_i32, %c0_i32_0 : i32, i32
  }
  func.func @transform_3(%arg0: i32) -> (i32, i32) {
    %c0_i32 = arith.constant 0 : i32
    %c0_i32_0 = arith.constant 0 : i32
    %c0_i32_1 = arith.constant 0 : i32
    return %c0_i32, %c0_i32_0 : i32, i32
  }
  func.func @transform_4(%arg0: i32) -> (i32, i32) {
    %c0_i32 = arith.constant 0 : i32
    %c0_i32_0 = arith.constant 0 : i32
    %c0_i32_1 = arith.constant 0 : i32
    return %c0_i32, %c0_i32_0 : i32, i32
  }
  func.func @transform_5(%arg0: i32) -> (i32, i32) {
    %c0_i32 = arith.constant 0 : i32
    %c0_i32_0 = arith.constant 0 : i32
    return %c0_i32, %arg0 : i32, i32
  }
}

</mosaic_0001>

<bundles_post_ra>
// kernel: tpu_custom_call.1
= control target key start
LH: loop header
LB: loop body
LE: loop exit
PB: predicated region body
PF: predicated region fallthrough
CT: control target
= control target key end

     0   :  { %s315_s0 = inlined_call_operand.vmem [shape: f32[8,91], index: 0, kind: input, shape index: {}]   ;;  %s316_s1 = inlined_call_operand.vmem [shape: f32[91,50], index: 1, kind: input, shape index: {}]   ;;  %s317_s2 = inlined_call_operand.vmem [shape: f32[1,50], index: 2, kind: input, shape index: {}]   ;;  %s318_s3 = inlined_call_operand.vmem [shape: f32[1,50], index: 3, kind: input, shape index: {}]   ;;  %s319_s4 = inlined_call_operand.<no memory space> [shape: f32[1,1], index: 4, kind: input, shape index: {}]   ;;  %s320_s5 = inlined_call_operand.hbm [shape: f32[1,8], index: 5, kind: output, shape index: {}]  }
   0x1   :  { %v10_v0 = vstv %s319_s4 }
   0x2   :  { %11 = vst [vmem:[#allocation2] sm:$0x1] %v10_v0 }
   0x3   :  { %v26_v1 = vld [vmem:[%s316_s1] sm:$0xff]  ;;  %v27_v2 = vld [vmem:[%s316_s1 + $0x8] sm:$0xff]  ;;  %v28_v3 = vld [vmem:[%s316_s1 + $0x10] sm:$0xff]  ;;  %v220_v4 = vmov 0.0   ;;  %vm221_vm0 = vmmov 0  }
   0x4   :  { %170 = vmatprep.subr.bf16.mxu0 %v220_v4  ;;  %v38_v5 = vpack.c.bf16 %v27_v2, %v26_v1  ;;  %v29_v6 = vld [vmem:[%s316_s1 + $0x18] sm:$0xff]  ;;  %182 = vmatprep.mubr.msk.bf16.mxu0 %vm221_vm0, %v220_v4  ;;  %v30_v8 = vld [vmem:[%s316_s1 + $0x20] sm:$0xff]  ;;  %v31_v9 = vld [vmem:[%s316_s1 + $0x28] sm:$0xff] }
   0x5   :  { %v39_v7 = vpack.c.bf16 %v29_v6, %v28_v3 }
   0x6   :  { %171 = vmatpush3.bf16.msra.mxu0 %v38_v5 }
   0x7   :  { %172 = vmatprep.subr.bf16.mxu0 %v220_v4 }
   0x8   :  { %12 = vsyncpa [#allocation4], 0  ;;  %v40_v10 = vpack.c.bf16 %v31_v9, %v30_v8  ;;  %v32_v11 = vld [vmem:[%s316_s1 + $0x30] sm:$0xff]  ;;  %v33_v12 = vld [vmem:[%s316_s1 + $0x38] sm:$0xff]  ;;  %vm55_vm1 = vcmask 1044480   ;;  %vm56_vm2 = vcmask 1045504   ;;  %v136_v48 = vlaneseq }
   0x9   :  { %v41_v13 = vpack.c.bf16 %v33_v12, %v32_v11  ;;  %v34_v14 = vld [vmem:[%s316_s1 + $0x40] sm:$0xff]  ;;  %v35_v15 = vld [vmem:[%s316_s1 + $0x48] sm:$0xff]  ;;  %v36_v16 = vld [vmem:[%s316_s1 + $0x50] sm:$0xff]  ;;  %v222_v18 = vmov 65535   ;;  %vm51_vm3 = vcmask 744448   ;;  %vm111_vm4 = vcmask 408576  }
   0xa   :  { %173 = vmatpush3.bf16.msra.mxu0 %v39_v7  ;;  %v37_v17 = vld [vmem:[%s316_s1 + $0x58] sm:$0x7]  ;;  %v57_v19 = vsel %vm55_vm1, 4294967295, %v222_v18  ;;  %v42_v20 = vpack.c.bf16 %v35_v15, %v34_v14  ;;  %v24_v24 = vld [vmem:[%s315_s0] sm:$0xff]  ;;  %v223_v36 = vmov 0   ;;  %v137_v49 = vand.u32 127, %v136_v48 }
   0xb   :  { %174 = vmatprep.subr.bf16.mxu0 %v220_v4  ;;  %v43_v21 = vpack.c.bf16 %v37_v17, %v36_v16  ;;  %v58_v22 = vsel %vm56_vm2, %v57_v19, 0  ;;  %v25_v25 = vpack.c.bf16 %v24_v24, %v24_v24  ;;  %v159_v26 = vld [vmem:[%s317_s2] ss:$0 sm:$0xff]  ;;  %191 = vset.pattern.permute.xlu0 %v223_v36  ;;  %v139_v50 = vshrl.u32 %v136_v48, 7  ;;  %s224_s0 = smov [#allocation3]  }
   0xc   :  { %v161_v31 = vld [vmem:[%s318_s3] ss:$0 sm:$0xff]  ;;  %s151_s2 = sshll.u32 %s224_s0, 4  ;;  %vm143_vm6 = vcmask 57344   ;;  %s152_s2 = int_to_ptr.vmem [resolvable:$true] %s151_s2 }
   0xd   :  { %v60_v23 = vand.u32 %v58_v22, %v43_v21  ;;  %v162_v37 = vld [vmem:[#allocation2] ss:$0 sm:$0xff]  ;;  %v140_v51 = vsub.s32 %v137_v49, %v139_v50  ;;  %s196_s3 = scalar_lea.vmem %s152_s2, 16  ;;  %s200_s23 = scalar_lea.vmem %s152_s2, 32 }
   0xe   :  { %175 = vmatpush3.bf16.msra.mxu0 %v40_v10  ;;  %p197_p0 = scmp.ne.s32.totalorder %s152_s2, %s196_s3  ;;  %p201_p1 = scmp.lt.s32.totalorder %s152_s2, %s152_s2 }
   0xf   :  { %176 = vmatprep.subr.bf16.mxu0 %v220_v4  ;;  %p202_p2 = scmp.lt.s32.totalorder %s200_s23, %s196_s3 }
  0x11   :  { %p203_p3 = por %p202_p2, %p201_p1 }
  0x12   :  { %177 = vmatpush3.bf16.msra.mxu0 %v41_v13 }
  0x13   :  { %178 = vmatprep.subr.bf16.mxu0 %v220_v4  ;;  %p204_p4 = pnand %p203_p3, %p197_p0 }
  0x16   :  { %179 = vmatpush3.bf16.msra.mxu0 %v42_v20 }
  0x17   :  { %180 = vmatprep.subr.bf16.mxu0 %v220_v4 }
  0x1a   :  { %181 = vmatpush3.bf16.msra.mxu0 %v60_v23 }
  0x1d   :  { %183 = vmatmul.mubr.msk.bf16.vlgmr.msra.gmra.mrb[0].mxu0 %vm51_vm3, %v25_v25 }
  0xf0   :  { %v96_v27 = vpop.f32.mrb[0].mxu0 }
  0xf1   :  { %v97_v28 = vadd.f32 %v159_v26, %v96_v27  ;;  %v184_v29 = vpop.f32.mrb[1].mxu0 }
  0xf2   :  { %v99_v30 = vpop.f32.mrb[2].mxu0 }
  0xf3   :  { %v102_v32 = vmax.f32 %v97_v28, 0.0  ;;  %v185_v33 = vpop.f32.mrb[3].mxu0 }
  0xf5   :  { %v110_v34 = vmul.f32 %v161_v31, %v102_v32 }
  0xf7   :  { %v112_v35 = vsel %vm111_vm4, %v110_v34, 0.0 }
  0xf8   :  { %113 = vadd.xlane.f32.xlu0 %v112_v35 }
 0x185   :  { %v114_v38 = vpop.xlane.xlu0 %113 }
 0x186   :  { %v122_v39 = vadd.f32 %v162_v37, %v114_v38 }
 0x188   :  { %v123_v40 = vand.u32 2147483647, %v122_v39  ;;  %vm129_vm5 = vcmp.ge.f32.partialorder %v122_v39, 0.0 }
 0x18a   :  { %v124_v41 = vsub.f32 0.0, %v123_v40 }
 0x18c   :  { %v125_v42 = vmul.f32 1.442695, %v124_v41 }
 0x18e   :  { %192 = vpow2.f32 %v125_v42 }
 0x198   :  { %v193_v43 = vpop.eup %192 }
 0x199   :  { %v127_v44 = vadd.f32 1.0, %v193_v43 }
 0x19b   :  { %194 = vrcp.f32 %v127_v44 }
 0x1a5   :  { %v195_v45 = vpop.eup %194 }
 0x1a6   :  { %v130_v46 = vmul.f32 %v195_v45, %v193_v43 }
 0x1a8   :  { %v131_v47 = vsel %vm129_vm5, %v195_v45, %v130_v46 }
 0x1a9   :  { %134 = vperm.xlu0 %191, %v131_v47  }
 0x228   :  { %v135_v52 = vpop.permute.xlu0 %134 }
 0x229   :  { %v141_v53 = vrot.slane %v135_v52, %v140_v51 }
 0x22b   :  { %144 = vst.msk [vmem:[#allocation3] sm:$0x1] %vm143_vm6, %v141_v53 }
 0x22c   :  { %207 = shalt.err (!%p204_p4)
}
 0x22d   :  { %s208_s26 = scalar_lea.hbm %s320_s5, 16 }
 0x22e   :  { %p209_p5 = scmp.ne.s32.totalorder %s320_s5, %s208_s26  ;;  %p212_p6 = scmp.lt.u32.totalorder %s208_s26, %s320_s5 }
 0x230   :  { %p214_p7 = pnand %p212_p6, %p209_p5 }
 0x232   :  { %217 = shalt.err (!%p214_p7)
}
 0x233   :  { %154 = dma.vmem_to_hbm [thread:$0]  %s152_s2, 16, %s320_s5, [#allocation4]  }
 0x234   :  { %218 = dma.done.wait [#allocation4], 16  }
 0x235   :  { %219 = vsyncadd [#allocation4], 4294967280 }
 0x236   :  { %158 = vsyncpa [#allocation4], 1 }

</bundles_post_ra>
